<compile_context>
chip_gen: v7x
topology: tpu7x:2x2x1
jax: 0.10.0
libtpu: 0.0.40
codegen_flags: <defaults>
</compile_context>

<pallas_src>
import jax
import jax.numpy as jnp
from jax.experimental import pallas as pl
from jax.experimental.pallas import tpu as pltpu

_LANE = 128
_NEG_BIG = -1.0e30  # "minus infinity" for padded class lanes (finite -> no NaNs)


def _balanced_softmax_kernel(logits_ref, log_prior_ref, labels_ref, loss_ref):
    # logits_ref:    (TILE_N, C_pad) input dtype (f32/bf16)   VMEM
    # log_prior_ref: (1, C_pad)      float32                  VMEM
    # labels_ref:    (TILE_N, 1)     int32                    VMEM
    # loss_ref:      (TILE_N, 1)     float32                  VMEM (per-row loss)
    x = logits_ref[...].astype(jnp.float32) + log_prior_ref[...]          # (T, C)

    # label one-hot mask from a 1-wide iota broadcast against (T, 1) labels.
    # NOTE: out-of-range labels silently select 0 (PyTorch would raise).
    labels = labels_ref[...]                                              # (T, 1)
    col = jax.lax.broadcasted_iota(jnp.int32, (1, x.shape[-1]), 1)        # (1, C)
    onehot = col == labels                                                # (T, C)

    # numerically stable logsumexp; both lane reductions consume the same x.
    m = jnp.max(x, axis=-1, keepdims=True)                                # (T, 1)
    p = jnp.exp(x - m)                                                    # (T, C)
    sum_p = jnp.sum(p, axis=-1, keepdims=True)                            # (T, 1)
    picked = jnp.sum(jnp.where(onehot, x, 0.0), axis=-1, keepdims=True)   # (T, 1)

    # TODO(synk): on v6e/v7x the max/compare/select passes could run in bf16
    # (2 elem/lane) and the two lane-sums could move to the idle MXU
    # ((T,C) @ ones((C,1))) if a bundle profile shows VALU/XLU saturating.
    loss_ref[...] = m + jnp.log(sum_p) - picked                           # (T, 1)


def _vmem_limit_bytes():
    """Per-generation scoped-VMEM limit: <= half of physical, capped at 64 MiB."""
    try:
        cap = int(pltpu.get_tpu_info().vmem_capacity_bytes)
    except Exception:
        cap = 64 * 1024 * 1024  # conservative default (v7x per-TensorCore size)
    return int(min(cap // 2, 64 * 1024 * 1024))


def _select_tile_n(n_rows, c_pad, itemsize, vmem_limit):
    """Pick batch-tile rows from a VMEM budget that counts the f32 working set."""
    sublane = max(8, 32 // itemsize)  # 8 rows f32, 16 bf16, 32 int8/fp8
    # effective VMEM bytes per row: double-buffered input block + f32 `x`
    # + f32 exp(x-m) intermediates materialized inside the kernel body.
    bytes_per_row = c_pad * (2 * itemsize + 12) + 64
    budget = max(1 << 20, min(vmem_limit // 2, 24 << 20))
    tile_n = (budget // bytes_per_row) // sublane * sublane
    tile_n = max(sublane, min(4096, tile_n))
    # never tile wider than the (sublane-rounded) batch itself
    tile_n = min(tile_n, pl.cdiv(n_rows, sublane) * sublane)
    # keep >= 2 grid steps whenever possible so both v7x TensorCores get work
    if n_rows > sublane:
        tile_n = min(tile_n, pl.cdiv(pl.cdiv(n_rows, 2), sublane) * sublane)
    return max(sublane, tile_n)


def balanced_softmax_loss(logits, labels, log_prior, *, tile_n=None):
    """logits: (N, C) f32/bf16, labels: (N,) int, log_prior: (C,) float."""
    N, C = logits.shape
    itemsize = jnp.dtype(logits.dtype).itemsize
    vmem_limit = _vmem_limit_bytes()

    log_prior_2d = log_prior.astype(jnp.float32).reshape(1, C)
    labels_2d = labels.astype(jnp.int32).reshape(N, 1)

    # Pad class axis to a lane multiple; pad classes get a huge-negative prior
    # so they never affect max/logsumexp and can never match a (valid) label.
    c_pad = pl.cdiv(C, _LANE) * _LANE
    if c_pad != C:
        logits = jnp.pad(logits, ((0, 0), (0, c_pad - C)))
        log_prior_2d = jnp.pad(log_prior_2d, ((0, 0), (0, c_pad - C)),
                               constant_values=_NEG_BIG)

    sublane = max(8, 32 // itemsize)
    if tile_n is None:
        tile_n = _select_tile_n(N, c_pad, itemsize, vmem_limit)
    tile_n = max(sublane, (tile_n // sublane) * sublane)

    n_padded = pl.cdiv(N, tile_n) * tile_n
    if n_padded != N:
        # tail rows compute garbage-but-finite losses; they are sliced off below
        # so the mean divides by the true N.
        logits = jnp.pad(logits, ((0, n_padded - N), (0, 0)))
        labels_2d = jnp.pad(labels_2d, ((0, n_padded - N), (0, 0)))

    per_row = pl.pallas_call(
        _balanced_softmax_kernel,
        out_shape=jax.ShapeDtypeStruct((n_padded, 1), jnp.float32),
        grid_spec=pltpu.PrefetchScalarGridSpec(
            num_scalar_prefetch=0,
            grid=(n_padded // tile_n,),
            in_specs=[
                pl.BlockSpec((tile_n, c_pad), lambda i: (i, 0)),   # logits tile
                pl.BlockSpec((1, c_pad), lambda i: (0, 0)),        # log prior
                pl.BlockSpec((tile_n, 1), lambda i: (i, 0)),       # labels tile
            ],
            out_specs=pl.BlockSpec((tile_n, 1), lambda i: (i, 0)),
        ),
        compiler_params=pltpu.CompilerParams(
            dimension_semantics=("parallel",),   # each step owns its own block
            vmem_limit_bytes=vmem_limit,
        ),
    )(logits, log_prior_2d, labels_2d)

    # TODO(synk): for vocab-sized C (>=64K) add an innermost "arbitrary" grid
    # axis over classes with an online (flash-style) logsumexp + running pick.
    # TODO(synk): the (tile_n, 1) per-row output is lane-sparse (masked vst);
    # switch to per-tile partial sums if the per-step store overhead shows up.
    return jnp.mean(per_row[:N, 0])


class BalancedSoftmaxLossPallas:
    """Mirror of the PyTorch module; holds log_prior built from cls_num_list."""

    def __init__(self, cls_num_list):
        cls_num_list = jnp.asarray(cls_num_list, dtype=jnp.float32)
        cls_prior = cls_num_list / jnp.sum(cls_num_list)
        self.log_prior = jnp.log(cls_prior)            # (C,)

    def __call__(self, logits, labels):
        return balanced_softmax_loss(logits, labels, self.log_prior)


def _reference(logits, labels, log_prior):
    adjusted = logits.astype(jnp.float32) + log_prior[None, :]
    lse = jax.nn.logsumexp(adjusted, axis=-1)
    picked = jnp.take_along_axis(adjusted, labels[:, None], axis=-1)[:, 0]
    return jnp.mean(lse - picked)


if __name__ == "__main__":
    key = jax.random.PRNGKey(0)

    # case 1: tiny, lane-aligned class count (single grid step)
    N, C = 8, 16
    cls_num_list = jnp.array([100.0 / (i + 1) for i in range(C)], dtype=jnp.float32)
    k_logits, k_labels, key = jax.random.split(key, 3)
    logits = jax.random.normal(k_logits, (N, C), dtype=jnp.float32)
    labels = jax.random.randint(k_labels, (N,), 0, C, dtype=jnp.int32)
    loss_fn = BalancedSoftmaxLossPallas(cls_num_list)
    loss = loss_fn(logits, labels)
    jax.block_until_ready(loss)
    ref = _reference(logits, labels, loss_fn.log_prior)
    assert jnp.allclose(loss, ref, atol=1e-5, rtol=1e-5), (loss, ref)

    # case 2: non-lane-aligned C and multi-step grid (exercises padding paths)
    N2, C2 = 48, 100
    cls_num_list2 = jnp.array([250.0 / (i + 1) for i in range(C2)], dtype=jnp.float32)
    k_logits2, k_labels2, key = jax.random.split(key, 3)
    logits2 = jax.random.normal(k_logits2, (N2, C2), dtype=jnp.float32)
    labels2 = jax.random.randint(k_labels2, (N2,), 0, C2, dtype=jnp.int32)
    loss_fn2 = BalancedSoftmaxLossPallas(cls_num_list2)
    loss2 = loss_fn2(logits2, labels2)
    jax.block_until_ready(loss2)
    ref2 = _reference(logits2, labels2, loss_fn2.log_prior)
    assert jnp.allclose(loss2, ref2, atol=1e-5, rtol=1e-5), (loss2, ref2)

    print("KERNEL_OK")
</pallas_src>

<mosaic_0001>
module attributes {stable_mosaic.version = 11 : i64} {
  func.func @_balanced_softmax_kernel(%arg0: i32, %arg1: memref<8x128xf32, #tpu.memory_space<vmem>>, %arg2: memref<1x128xf32, #tpu.memory_space<vmem>>, %arg3: memref<8x1xi32, #tpu.memory_space<vmem>>, %arg4: memref<8x1xf32, #tpu.memory_space<vmem>>) attributes {dimension_semantics = [#tpu.dimension_semantics<parallel>], iteration_bounds = array<i64: 1>, scalar_prefetch = 0 : i64, scratch_operands = 0 : i64, tpu.core_type = #tpu.core_type<tc>, window_params = [{transform_indices = @transform_0, window_bounds = array<i64: 8, 128>}, {pipeline_mode = #tpu.pipeline_mode<synchronous>, transform_indices = @transform_1, window_bounds = array<i64: 1, 128>}, {transform_indices = @transform_2, window_bounds = array<i64: 8, 1>}, {transform_indices = @transform_3, window_bounds = array<i64: 8, 1>}]} {
    %c0 = arith.constant 0 : index
    %c0_0 = arith.constant 0 : index
    %0 = vector.load %arg1[%c0, %c0_0] : memref<8x128xf32, #tpu.memory_space<vmem>>, vector<8x128xf32>
    %c0_1 = arith.constant 0 : index
    %c0_2 = arith.constant 0 : index
    %1 = vector.load %arg2[%c0_1, %c0_2] : memref<1x128xf32, #tpu.memory_space<vmem>>, vector<1x128xf32>
    %2 = vector.broadcast %1 : vector<1x128xf32> to vector<8x128xf32>
    %3 = arith.addf %0, %2 : vector<8x128xf32>
    %c0_3 = arith.constant 0 : index
    %c0_4 = arith.constant 0 : index
    %4 = vector.load %arg3[%c0_3, %c0_4] : memref<8x1xi32, #tpu.memory_space<vmem>>, vector<8x1xi32>
    %5 = tpu.iota {dimensions = array<i32: 1>} : vector<1x128xi32>
    %6 = vector.broadcast %5 : vector<1x128xi32> to vector<8x128xi32>
    %7 = vector.broadcast %4 : vector<8x1xi32> to vector<8x128xi32>
    %8 = arith.cmpi eq, %6, %7 : vector<8x128xi32>
    %cst = arith.constant dense<0xFF800000> : vector<8xf32>
    %9 = vector.multi_reduction <maximumf>, %3, %cst [1] : vector<8x128xf32> to vector<8xf32>
    %10 = vector.shape_cast %9 : vector<8xf32> to vector<8x1xf32>
    %11 = vector.broadcast %10 : vector<8x1xf32> to vector<8x128xf32>
    %12 = arith.subf %3, %11 : vector<8x128xf32>
    %13 = math.exp %12 : vector<8x128xf32>
    %cst_5 = arith.constant dense<0.000000e+00> : vector<8xf32>
    %14 = vector.multi_reduction <add>, %13, %cst_5 [1] : vector<8x128xf32> to vector<8xf32>
    %15 = vector.shape_cast %14 : vector<8xf32> to vector<8x1xf32>
    %cst_6 = arith.constant 0.000000e+00 : f32
    %16 = vector.broadcast %cst_6 : f32 to vector<8x128xf32>
    %17 = arith.select %8, %3, %16 : vector<8x128xi1>, vector<8x128xf32>
    %cst_7 = arith.constant dense<0.000000e+00> : vector<8xf32>
    %18 = vector.multi_reduction <add>, %17, %cst_7 [1] : vector<8x128xf32> to vector<8xf32>
    %19 = vector.shape_cast %18 : vector<8xf32> to vector<8x1xf32>
    %20 = math.log %15 : vector<8x1xf32>
    %21 = arith.addf %10, %20 : vector<8x1xf32>
    %22 = arith.subf %21, %19 : vector<8x1xf32>
    %c0_8 = arith.constant 0 : index
    %c0_9 = arith.constant 0 : index
    %23 = vector.load %arg4[%c0_8, %c0_9] : memref<8x1xf32, #tpu.memory_space<vmem>>, vector<8x1xf32>
    tpu.vector_store %arg4[%c0_8, %c0_9], %22 {strides = array<i32>} : memref<8x1xf32, #tpu.memory_space<vmem>>, vector<8x1xf32>,
    return
  }
  func.func @transform_0(%arg0: i32) -> (i32, i32) {
    %c0_i32 = arith.constant 0 : i32
    %c0_i32_0 = arith.constant 0 : i32
    return %arg0, %c0_i32 : i32, i32
  }
  func.func @transform_1(%arg0: i32) -> (i32, i32) {
    %c0_i32 = arith.constant 0 : i32
    %c0_i32_0 = arith.constant 0 : i32
    %c0_i32_1 = arith.constant 0 : i32
    return %c0_i32, %c0_i32_0 : i32, i32
  }
  func.func @transform_2(%arg0: i32) -> (i32, i32) {
    %c0_i32 = arith.constant 0 : i32
    %c0_i32_0 = arith.constant 0 : i32
    return %arg0, %c0_i32 : i32, i32
  }
  func.func @transform_3(%arg0: i32) -> (i32, i32) {
    %c0_i32 = arith.constant 0 : i32
    %c0_i32_0 = arith.constant 0 : i32
    return %arg0, %c0_i32 : i32, i32
  }
}

</mosaic_0001>

<bundles_post_ra>
// kernel: tpu_custom_call.1
= control target key start
LH: loop header
LB: loop body
LE: loop exit
PB: predicated region body
PF: predicated region fallthrough
CT: control target
= control target key end

     0   :  { %v57_v2 = vmov 0   ;;  %v24_v8 = vlaneseq  ;;  %vm44_vm1 = vcmask 7168   ;;  %s90_s0 = inlined_call_operand.vmem [shape: f32[8,128], index: 0, kind: input, shape index: {}]   ;;  %s91_s1 = inlined_call_operand.vmem [shape: f32[1,128], index: 1, kind: input, shape index: {}]   ;;  %s92_s2 = inlined_call_operand.vmem [shape: s32[8,1], index: 2, kind: input, shape index: {}]   ;;  %s93_s3 = inlined_call_operand.vmem [shape: f32[8,1], index: 3, kind: output, shape index: {}]  }
   0x1   :  { %v14_v0 = vld [vmem:[%s90_s0] sm:$0xff]  ;;  %52 = vset.pattern.permute.xlu0 %v57_v2 }
   0x2   :  { %v50_v1 = vld [vmem:[%s91_s1] ss:$0 sm:$0xff]  ;;  %v25_v9 = vand.u32 127, %v24_v8 }
   0x3   :  { %v22_v3 = vadd.f32 %v50_v1, %v14_v0  ;;  %v23_v4 = vld [vmem:[%s92_s2] sm:$0xff] }
   0x5   :  { %30 = vmax.xlane.f32.xlu0 %v22_v3 }
  0x1b   :  { %27 = vperm.xlu0 %52, %v23_v4  }
  0x92   :  { %v31_v5 = vpop.xlane.xlu0 %30 }
  0x93   :  { %v32_v6 = vsub.f32 %v22_v3, %v31_v5 }
  0x95   :  { %v33_v7 = vmul.f32 1.442695, %v32_v6 }
  0x97   :  { %53 = vpow2.f32 %v33_v7 }
  0x9a   :  { %v28_v10 = vpop.permute.xlu0 %27 }
  0x9b   :  { %vm29_vm0 = vcmp.eq.s32.totalorder %v25_v9, %v28_v10 }
  0x9c   :  { %v37_v12 = vsel %vm29_vm0, %v22_v3, 0.0 }
  0xa1   :  { %v54_v11 = vpop.eup %53 }
  0xa2   :  { %35 = vadd.xlane.f32.xlu1 %v54_v11 }
  0xa6   :  { %38 = vadd.xlane.f32.xlu1 %v37_v12 }
 0x12f   :  { %v36_v13 = vpop.xlane.xlu1 %35 }
 0x130   :  { %55 = vlog2.f32 %v36_v13 }
 0x133   :  { %v39_v16 = vpop.xlane.xlu1 %38 }
 0x13a   :  { %v56_v14 = vpop.eup %55 }
 0x13b   :  { %v41_v15 = vmul.f32 0.6931472, %v56_v14 }
 0x13d   :  { %v42_v17 = vadd.f32 %v41_v15, %v31_v5 }
 0x13f   :  { %v43_v18 = vsub.f32 %v42_v17, %v39_v16 }
 0x141   :  { %45 = vst.msk [vmem:[%s93_s3] sm:$0xff] %vm44_vm1, %v43_v18 }

</bundles_post_ra>
